<compile_context>
chip_gen: v6e
topology: v6e:2x2x1
jax: 0.10.0
libtpu: 0.0.40
codegen_flags: <defaults>
</compile_context>

<pallas_src>
import functools

import jax
import jax.numpy as jnp
from jax.experimental import pallas as pl
from jax.experimental.pallas import tpu as pltpu


def _round_up(x: int, m: int) -> int:
    return ((x + m - 1) // m) * m


_S_TILE_MAX = 64  # sublane-rows of boxes per grid step (64 * 128 = 8192 boxes / step)


def _giou_partial_kernel(pred_ref, targ_ref, out_ref, *, n_valid: int, s_tile: int):
    """pred_ref/targ_ref: (4, s_tile, 128) f32 coordinate-major tiles.

    out_ref: (8, 128) f32 lane/sublane-dense partial sum of the per-box loss
    for this grid step (padded boxes masked to zero).
    """
    # Read coordinate planes directly from the refs (no full-tile materialize+slice).
    px1 = pred_ref[0]
    py1 = pred_ref[1]
    px2 = pred_ref[2]
    py2 = pred_ref[3]
    tx1 = targ_ref[0]
    ty1 = targ_ref[1]
    tx2 = targ_ref[2]
    ty2 = targ_ref[3]

    # _validate_and_fix_boxes: if x1 > x2 or y1 > y2 -> clamp the whole box to >= 0.
    def validate(x1, y1, x2, y2):
        invalid = jnp.logical_or(x1 > x2, y1 > y2)
        return (jnp.where(invalid, jnp.maximum(x1, 0.0), x1),
                jnp.where(invalid, jnp.maximum(y1, 0.0), y1),
                jnp.where(invalid, jnp.maximum(x2, 0.0), x2),
                jnp.where(invalid, jnp.maximum(y2, 0.0), y2))

    px1, py1, px2, py2 = validate(px1, py1, px2, py2)
    tx1, ty1, tx2, ty2 = validate(tx1, ty1, tx2, ty2)

    # _fix_invalid_boxes: x2 = max(x2, x1 + 1e-6), y2 = max(y2, y1 + 1e-6).
    px2 = jnp.maximum(px2, px1 + 1e-6)
    py2 = jnp.maximum(py2, py1 + 1e-6)
    tx2 = jnp.maximum(tx2, tx1 + 1e-6)
    ty2 = jnp.maximum(ty2, ty1 + 1e-6)

    # Diagonal of generalized_box_iou (pred[i] vs target[i]).
    area_p = (px2 - px1) * (py2 - py1)
    area_t = (tx2 - tx1) * (ty2 - ty1)
    iw = jnp.maximum(jnp.minimum(px2, tx2) - jnp.maximum(px1, tx1), 0.0)
    ih = jnp.maximum(jnp.minimum(py2, ty2) - jnp.maximum(py1, ty1), 0.0)
    inter = iw * ih
    union = area_p + area_t - inter
    # Exact divides (not approx reciprocal) to stay within the rtol=1e-5 reference.
    iou = inter / (union + 1e-7)

    ew = jnp.maximum(jnp.maximum(px2, tx2) - jnp.minimum(px1, tx1), 0.0)
    eh = jnp.maximum(jnp.maximum(py2, ty2) - jnp.minimum(py1, ty1), 0.0)
    enc = ew * eh

    giou = iou - (enc - union) / (enc + 1e-7)
    loss = jnp.maximum(1.0 - giou, 0.0)  # (s_tile, 128)

    # Mask padded boxes by their global index (box j lives at (j // 128, j % 128)).
    base = pl.program_id(0) * (s_tile * 128)
    row = jax.lax.broadcasted_iota(jnp.int32, (s_tile, 128), 0)
    col = jax.lax.broadcasted_iota(jnp.int32, (s_tile, 128), 1)
    gidx = base + row * 128 + col
    loss = jnp.where(gidx < n_valid, loss, 0.0)

    # Per-block partial sums, kept lane/sublane dense; pure VPU vreg adds
    # (static, sublane-aligned slices -> no cross-lane reduce on the per-tile path).
    partial = loss[0:8, :]
    for k in range(1, s_tile // 8):
        partial = partial + loss[8 * k:8 * (k + 1), :]
    out_ref[...] = partial


def giou_loss(pred_boxes, target_boxes):
    """pred_boxes, target_boxes: [N, 4] float32 [x1, y1, x2, y2]. Returns scalar loss."""
    n = int(pred_boxes.shape[0])
    if n == 0 or int(target_boxes.shape[0]) == 0:
        # Module returns zeros for empty input.
        return jnp.float32(0.0)

    s_needed = max(1, -(-n // 128))                 # sublane-rows of 128 boxes
    s_tile = min(_S_TILE_MAX, _round_up(s_needed, 8))
    s_total = _round_up(s_needed, s_tile)
    n_pad = s_total * 128
    grid = s_total // s_tile

    def pack(b):
        # Single coordinate-major repack pass: (N, 4) -> (4, S, 128), lane/sublane dense.
        bt = jnp.transpose(b.astype(jnp.float32))            # (4, N)
        if n_pad != n:
            bt = jnp.pad(bt, ((0, 0), (0, n_pad - n)))        # (4, N_pad)
        return bt.reshape(4, s_total, 128)

    pred_t = pack(pred_boxes)
    targ_t = pack(target_boxes)

    kernel = functools.partial(_giou_partial_kernel, n_valid=n, s_tile=s_tile)

    partials = pl.pallas_call(
        kernel,
        out_shape=jax.ShapeDtypeStruct((grid * 8, 128), jnp.float32),
        grid=(grid,),
        in_specs=[
            pl.BlockSpec((4, s_tile, 128), lambda i: (0, i, 0)),
            pl.BlockSpec((4, s_tile, 128), lambda i: (0, i, 0)),
        ],
        out_specs=pl.BlockSpec((8, 128), lambda i: (i, 0)),
        compiler_params=pltpu.CompilerParams(
            dimension_semantics=("parallel",)),
    )(pred_t, targ_t)

    # Tiny final cross-lane reduction + mean normalization outside the kernel.
    return jnp.sum(partials) / n


def _ref_giou_loss(pred, targ):
    """Pure-JAX reference mirroring the PyTorch module (diagonal of generalized_box_iou)."""
    def validate(b):
        invalid = (b[:, 0] > b[:, 2]) | (b[:, 1] > b[:, 3])
        return jnp.where(invalid[:, None], jnp.maximum(b, 0.0), b)

    def fix(b):
        x1, y1, x2, y2 = b[:, 0], b[:, 1], b[:, 2], b[:, 3]
        return jnp.stack(
            [x1, y1, jnp.maximum(x2, x1 + 1e-6), jnp.maximum(y2, y1 + 1e-6)], axis=1)

    p = fix(validate(pred))
    t = fix(validate(targ))
    area_p = (p[:, 2] - p[:, 0]) * (p[:, 3] - p[:, 1])
    area_t = (t[:, 2] - t[:, 0]) * (t[:, 3] - t[:, 1])
    lt = jnp.maximum(p[:, :2], t[:, :2])
    rb = jnp.minimum(p[:, 2:], t[:, 2:])
    wh = jnp.maximum(rb - lt, 0.0)
    inter = wh[:, 0] * wh[:, 1]
    union = area_p + area_t - inter
    iou = inter / (union + 1e-7)
    elt = jnp.minimum(p[:, :2], t[:, :2])
    erb = jnp.maximum(p[:, 2:], t[:, 2:])
    ewh = jnp.maximum(erb - elt, 0.0)
    enc = ewh[:, 0] * ewh[:, 1]
    giou = iou - (enc - union) / (enc + 1e-7)
    return jnp.mean(jnp.maximum(1.0 - giou, 0.0))


if __name__ == "__main__":
    key = jax.random.PRNGKey(0)
    k1, k2, k3, k4 = jax.random.split(key, 4)

    loss_fn = jax.jit(giou_loss)

    # Small case matching the module's [N, 4] interface.  Random coords in [0, 16);
    # some boxes are "invalid" (x2 < x1 or y2 < y1), exercising validation + fix paths.
    N = 8
    pred_small = jax.random.uniform(k1, (N, 4), dtype=jnp.float32) * 16.0
    targ_small = jax.random.uniform(k2, (N, 4), dtype=jnp.float32) * 16.0
    loss = loss_fn(pred_small, targ_small)
    jax.block_until_ready(loss)
    ref = _ref_giou_loss(pred_small, targ_small)
    assert jnp.allclose(loss, ref, rtol=1e-5, atol=1e-6), (loss, ref)

    # Larger case: exercises the multi-block parallel grid and the padding mask.
    N2 = 20000
    pred_big = jax.random.uniform(k3, (N2, 4), dtype=jnp.float32) * 64.0
    targ_big = jax.random.uniform(k4, (N2, 4), dtype=jnp.float32) * 64.0
    loss2 = loss_fn(pred_big, targ_big)
    jax.block_until_ready(loss2)
    ref2 = _ref_giou_loss(pred_big, targ_big)
    assert jnp.allclose(loss2, ref2, rtol=1e-4, atol=1e-6), (loss2, ref2)

    print("KERNEL_OK")
</pallas_src>

<mosaic_0001>
module attributes {stable_mosaic.version = 11 : i64} {
  func.func @_giou_partial_kernel(%arg0: i32, %arg1: memref<4x8x128xf32, #tpu.memory_space<vmem>>, %arg2: memref<4x8x128xf32, #tpu.memory_space<vmem>>, %arg3: memref<8x128xf32, #tpu.memory_space<vmem>>) attributes {dimension_semantics = [#tpu.dimension_semantics<parallel>], iteration_bounds = array<i64: 1>, scalar_prefetch = 0 : i64, scratch_operands = 0 : i64, tpu.core_type = #tpu.core_type<tc>, window_params = [{transform_indices = @transform_0, window_bounds = array<i64: 4, 8, 128>}, {transform_indices = @transform_1, window_bounds = array<i64: 4, 8, 128>}, {transform_indices = @transform_2, window_bounds = array<i64: 8, 128>}]} {
    %c0 = arith.constant 0 : index
    %c0_0 = arith.constant 0 : index
    %c0_1 = arith.constant 0 : index
    %0 = vector.load %arg1[%c0, %c0_0, %c0_1] : memref<4x8x128xf32, #tpu.memory_space<vmem>>, vector<1x8x128xf32>
    %1 = vector.shape_cast %0 : vector<1x8x128xf32> to vector<8x128xf32>
    %c1 = arith.constant 1 : index
    %c0_2 = arith.constant 0 : index
    %c0_3 = arith.constant 0 : index
    %2 = vector.load %arg1[%c1, %c0_2, %c0_3] : memref<4x8x128xf32, #tpu.memory_space<vmem>>, vector<1x8x128xf32>
    %3 = vector.shape_cast %2 : vector<1x8x128xf32> to vector<8x128xf32>
    %c2 = arith.constant 2 : index
    %c0_4 = arith.constant 0 : index
    %c0_5 = arith.constant 0 : index
    %4 = vector.load %arg1[%c2, %c0_4, %c0_5] : memref<4x8x128xf32, #tpu.memory_space<vmem>>, vector<1x8x128xf32>
    %5 = vector.shape_cast %4 : vector<1x8x128xf32> to vector<8x128xf32>
    %c3 = arith.constant 3 : index
    %c0_6 = arith.constant 0 : index
    %c0_7 = arith.constant 0 : index
    %6 = vector.load %arg1[%c3, %c0_6, %c0_7] : memref<4x8x128xf32, #tpu.memory_space<vmem>>, vector<1x8x128xf32>
    %7 = vector.shape_cast %6 : vector<1x8x128xf32> to vector<8x128xf32>
    %c0_8 = arith.constant 0 : index
    %c0_9 = arith.constant 0 : index
    %c0_10 = arith.constant 0 : index
    %8 = vector.load %arg2[%c0_8, %c0_9, %c0_10] : memref<4x8x128xf32, #tpu.memory_space<vmem>>, vector<1x8x128xf32>
    %9 = vector.shape_cast %8 : vector<1x8x128xf32> to vector<8x128xf32>
    %c1_11 = arith.constant 1 : index
    %c0_12 = arith.constant 0 : index
    %c0_13 = arith.constant 0 : index
    %10 = vector.load %arg2[%c1_11, %c0_12, %c0_13] : memref<4x8x128xf32, #tpu.memory_space<vmem>>, vector<1x8x128xf32>
    %11 = vector.shape_cast %10 : vector<1x8x128xf32> to vector<8x128xf32>
    %c2_14 = arith.constant 2 : index
    %c0_15 = arith.constant 0 : index
    %c0_16 = arith.constant 0 : index
    %12 = vector.load %arg2[%c2_14, %c0_15, %c0_16] : memref<4x8x128xf32, #tpu.memory_space<vmem>>, vector<1x8x128xf32>
    %13 = vector.shape_cast %12 : vector<1x8x128xf32> to vector<8x128xf32>
    %c3_17 = arith.constant 3 : index
    %c0_18 = arith.constant 0 : index
    %c0_19 = arith.constant 0 : index
    %14 = vector.load %arg2[%c3_17, %c0_18, %c0_19] : memref<4x8x128xf32, #tpu.memory_space<vmem>>, vector<1x8x128xf32>
    %15 = vector.shape_cast %14 : vector<1x8x128xf32> to vector<8x128xf32>
    %16 = arith.cmpf ogt, %1, %5 : vector<8x128xf32>
    %17 = arith.cmpf ogt, %3, %7 : vector<8x128xf32>
    %18 = arith.ori %16, %17 : vector<8x128xi1>
    %cst = arith.constant 0.000000e+00 : f32
    %19 = vector.broadcast %cst : f32 to vector<8x128xf32>
    %20 = arith.maximumf %1, %19 : vector<8x128xf32>
    %21 = arith.select %18, %20, %1 : vector<8x128xi1>, vector<8x128xf32>
    %cst_20 = arith.constant 0.000000e+00 : f32
    %22 = vector.broadcast %cst_20 : f32 to vector<8x128xf32>
    %23 = arith.maximumf %3, %22 : vector<8x128xf32>
    %24 = arith.select %18, %23, %3 : vector<8x128xi1>, vector<8x128xf32>
    %cst_21 = arith.constant 0.000000e+00 : f32
    %25 = vector.broadcast %cst_21 : f32 to vector<8x128xf32>
    %26 = arith.maximumf %5, %25 : vector<8x128xf32>
    %27 = arith.select %18, %26, %5 : vector<8x128xi1>, vector<8x128xf32>
    %cst_22 = arith.constant 0.000000e+00 : f32
    %28 = vector.broadcast %cst_22 : f32 to vector<8x128xf32>
    %29 = arith.maximumf %7, %28 : vector<8x128xf32>
    %30 = arith.select %18, %29, %7 : vector<8x128xi1>, vector<8x128xf32>
    %31 = arith.cmpf ogt, %9, %13 : vector<8x128xf32>
    %32 = arith.cmpf ogt, %11, %15 : vector<8x128xf32>
    %33 = arith.ori %31, %32 : vector<8x128xi1>
    %cst_23 = arith.constant 0.000000e+00 : f32
    %34 = vector.broadcast %cst_23 : f32 to vector<8x128xf32>
    %35 = arith.maximumf %9, %34 : vector<8x128xf32>
    %36 = arith.select %33, %35, %9 : vector<8x128xi1>, vector<8x128xf32>
    %cst_24 = arith.constant 0.000000e+00 : f32
    %37 = vector.broadcast %cst_24 : f32 to vector<8x128xf32>
    %38 = arith.maximumf %11, %37 : vector<8x128xf32>
    %39 = arith.select %33, %38, %11 : vector<8x128xi1>, vector<8x128xf32>
    %cst_25 = arith.constant 0.000000e+00 : f32
    %40 = vector.broadcast %cst_25 : f32 to vector<8x128xf32>
    %41 = arith.maximumf %13, %40 : vector<8x128xf32>
    %42 = arith.select %33, %41, %13 : vector<8x128xi1>, vector<8x128xf32>
    %cst_26 = arith.constant 0.000000e+00 : f32
    %43 = vector.broadcast %cst_26 : f32 to vector<8x128xf32>
    %44 = arith.maximumf %15, %43 : vector<8x128xf32>
    %45 = arith.select %33, %44, %15 : vector<8x128xi1>, vector<8x128xf32>
    %cst_27 = arith.constant 9.99999997E-7 : f32
    %46 = vector.broadcast %cst_27 : f32 to vector<8x128xf32>
    %47 = arith.addf %21, %46 : vector<8x128xf32>
    %48 = arith.maximumf %27, %47 : vector<8x128xf32>
    %cst_28 = arith.constant 9.99999997E-7 : f32
    %49 = vector.broadcast %cst_28 : f32 to vector<8x128xf32>
    %50 = arith.addf %24, %49 : vector<8x128xf32>
    %51 = arith.maximumf %30, %50 : vector<8x128xf32>
    %cst_29 = arith.constant 9.99999997E-7 : f32
    %52 = vector.broadcast %cst_29 : f32 to vector<8x128xf32>
    %53 = arith.addf %36, %52 : vector<8x128xf32>
    %54 = arith.maximumf %42, %53 : vector<8x128xf32>
    %cst_30 = arith.constant 9.99999997E-7 : f32
    %55 = vector.broadcast %cst_30 : f32 to vector<8x128xf32>
    %56 = arith.addf %39, %55 : vector<8x128xf32>
    %57 = arith.maximumf %45, %56 : vector<8x128xf32>
    %58 = arith.subf %48, %21 : vector<8x128xf32>
    %59 = arith.subf %51, %24 : vector<8x128xf32>
    %60 = arith.mulf %58, %59 : vector<8x128xf32>
    %61 = arith.subf %54, %36 : vector<8x128xf32>
    %62 = arith.subf %57, %39 : vector<8x128xf32>
    %63 = arith.mulf %61, %62 : vector<8x128xf32>
    %64 = arith.minimumf %48, %54 : vector<8x128xf32>
    %65 = arith.maximumf %21, %36 : vector<8x128xf32>
    %66 = arith.subf %64, %65 : vector<8x128xf32>
    %cst_31 = arith.constant 0.000000e+00 : f32
    %67 = vector.broadcast %cst_31 : f32 to vector<8x128xf32>
    %68 = arith.maximumf %66, %67 : vector<8x128xf32>
    %69 = arith.minimumf %51, %57 : vector<8x128xf32>
    %70 = arith.maximumf %24, %39 : vector<8x128xf32>
    %71 = arith.subf %69, %70 : vector<8x128xf32>
    %cst_32 = arith.constant 0.000000e+00 : f32
    %72 = vector.broadcast %cst_32 : f32 to vector<8x128xf32>
    %73 = arith.maximumf %71, %72 : vector<8x128xf32>
    %74 = arith.mulf %68, %73 : vector<8x128xf32>
    %75 = arith.addf %60, %63 : vector<8x128xf32>
    %76 = arith.subf %75, %74 : vector<8x128xf32>
    %cst_33 = arith.constant 1.000000e-07 : f32
    %77 = vector.broadcast %cst_33 : f32 to vector<8x128xf32>
    %78 = arith.addf %76, %77 : vector<8x128xf32>
    %79 = arith.divf %74, %78 : vector<8x128xf32>
    %80 = arith.maximumf %48, %54 : vector<8x128xf32>
    %81 = arith.minimumf %21, %36 : vector<8x128xf32>
    %82 = arith.subf %80, %81 : vector<8x128xf32>
    %cst_34 = arith.constant 0.000000e+00 : f32
    %83 = vector.broadcast %cst_34 : f32 to vector<8x128xf32>
    %84 = arith.maximumf %82, %83 : vector<8x128xf32>
    %85 = arith.maximumf %51, %57 : vector<8x128xf32>
    %86 = arith.minimumf %24, %39 : vector<8x128xf32>
    %87 = arith.subf %85, %86 : vector<8x128xf32>
    %cst_35 = arith.constant 0.000000e+00 : f32
    %88 = vector.broadcast %cst_35 : f32 to vector<8x128xf32>
    %89 = arith.maximumf %87, %88 : vector<8x128xf32>
    %90 = arith.mulf %84, %89 : vector<8x128xf32>
    %91 = arith.subf %90, %76 : vector<8x128xf32>
    %cst_36 = arith.constant 1.000000e-07 : f32
    %92 = vector.broadcast %cst_36 : f32 to vector<8x128xf32>
    %93 = arith.addf %90, %92 : vector<8x128xf32>
    %94 = arith.divf %91, %93 : vector<8x128xf32>
    %95 = arith.subf %79, %94 : vector<8x128xf32>
    %cst_37 = arith.constant 1.000000e+00 : f32
    %96 = vector.broadcast %cst_37 : f32 to vector<8x128xf32>
    %97 = arith.subf %96, %95 : vector<8x128xf32>
    %cst_38 = arith.constant 0.000000e+00 : f32
    %98 = vector.broadcast %cst_38 : f32 to vector<8x128xf32>
    %99 = arith.maximumf %97, %98 : vector<8x128xf32>
    %c1024_i32 = arith.constant 1024 : i32
    %100 = arith.muli %arg0, %c1024_i32 : i32
    %101 = tpu.iota {dimensions = array<i32: 0>} : vector<8x128xi32>
    %102 = tpu.iota {dimensions = array<i32: 1>} : vector<8x128xi32>
    %c128_i32 = arith.constant 128 : i32
    %103 = vector.broadcast %c128_i32 : i32 to vector<8x128xi32>
    %104 = arith.muli %101, %103 : vector<8x128xi32>
    %105 = vector.broadcast %100 : i32 to vector<8x128xi32>
    %106 = arith.addi %105, %104 : vector<8x128xi32>
    %107 = arith.addi %106, %102 : vector<8x128xi32>
    %c8_i32 = arith.constant 8 : i32
    %108 = vector.broadcast %c8_i32 : i32 to vector<8x128xi32>
    %109 = arith.cmpi slt, %107, %108 : vector<8x128xi32>
    %cst_39 = arith.constant 0.000000e+00 : f32
    %110 = vector.broadcast %cst_39 : f32 to vector<8x128xf32>
    %111 = arith.select %109, %99, %110 : vector<8x128xi1>, vector<8x128xf32>
    %c0_40 = arith.constant 0 : index
    %c0_41 = arith.constant 0 : index
    %112 = vector.load %arg3[%c0_40, %c0_41] : memref<8x128xf32, #tpu.memory_space<vmem>>, vector<8x128xf32>
    tpu.vector_store %arg3[%c0_40, %c0_41], %111 {strides = array<i32>} : memref<8x128xf32, #tpu.memory_space<vmem>>, vector<8x128xf32>,
    return
  }
  func.func @transform_0(%arg0: i32) -> (i32, i32, i32) {
    %c0_i32 = arith.constant 0 : i32
    %c0_i32_0 = arith.constant 0 : i32
    %c0_i32_1 = arith.constant 0 : i32
    return %c0_i32, %arg0, %c0_i32_0 : i32, i32, i32
  }
  func.func @transform_1(%arg0: i32) -> (i32, i32, i32) {
    %c0_i32 = arith.constant 0 : i32
    %c0_i32_0 = arith.constant 0 : i32
    %c0_i32_1 = arith.constant 0 : i32
    return %c0_i32, %arg0, %c0_i32_0 : i32, i32, i32
  }
  func.func @transform_2(%arg0: i32) -> (i32, i32) {
    %c0_i32 = arith.constant 0 : i32
    %c0_i32_0 = arith.constant 0 : i32
    return %arg0, %c0_i32 : i32, i32
  }
}

</mosaic_0001>

<bundles_post_ra>
// kernel: giou_loss.1
= control target key start
LH: loop header
LB: loop body
LE: loop exit
PB: predicated region body
PF: predicated region fallthrough
CT: control target
= control target key end

     0   :  { %v92_v60 = vlaneseq  ;;  %s159_s0 = inlined_call_operand.vmem [shape: f32[4,8,128], index: 0, kind: input, shape index: {}]   ;;  %s160_s1 = inlined_call_operand.vmem [shape: f32[4,8,128], index: 1, kind: input, shape index: {}]   ;;  %s161_s2 = inlined_call_operand.vmem [shape: f32[8,128], index: 2, kind: output, shape index: {}]  }
   0x1   :  { %v11_v0 = vld [vmem:[%s159_s0] sm:$0xff]  ;;  %v107_v1 = vld [vmem:[%s159_s0 + $0x8] sm:$0xff]  ;;  %v108_v2 = vld [vmem:[%s159_s0 + $0x10] sm:$0xff] }
   0x2   :  { %v109_v3 = vld [vmem:[%s159_s0 + $0x18] sm:$0xff]  ;;  %v18_v4 = vld [vmem:[%s160_s1] sm:$0xff]  ;;  %v110_v5 = vld [vmem:[%s160_s1 + $0x8] sm:$0xff]  ;;  %vm25_vm0 = vcmp.gt.f32.partialorder %v11_v0, %v108_v2  ;;  %v28_v6 = vmax.f32 %v11_v0, 0.0  ;;  %v30_v7 = vmax.f32 %v107_v1, 0.0  ;;  %v32_v8 = vmax.f32 %v108_v2, 0.0 }
   0x3   :  { %v111_v9 = vld [vmem:[%s160_s1 + $0x10] sm:$0xff]  ;;  %v112_v10 = vld [vmem:[%s160_s1 + $0x18] sm:$0xff]  ;;  %vm26_vm1 = vcmp.gt.f32.partialorder %v107_v1, %v109_v3  ;;  %v34_v11 = vmax.f32 %v109_v3, 0.0  ;;  %v39_v12 = vmax.f32 %v18_v4, 0.0  ;;  %v41_v13 = vmax.f32 %v110_v5, 0.0 }
   0x4   :  { %vm27_vm2 = vmor %vm25_vm0, %vm26_vm1  ;;  %vm36_vm3 = vcmp.gt.f32.partialorder %v18_v4, %v111_v9  ;;  %vm37_vm4 = vcmp.gt.f32.partialorder %v110_v5, %v112_v10  ;;  %v43_v14 = vmax.f32 %v111_v9, 0.0  ;;  %v45_v15 = vmax.f32 %v112_v10, 0.0 }
   0x5   :  { %v29_v16 = vsel %vm27_vm2, %v28_v6, %v11_v0  ;;  %v31_v17 = vsel %vm27_vm2, %v30_v7, %v107_v1  ;;  %v33_v18 = vsel %vm27_vm2, %v32_v8, %v108_v2  ;;  %vm38_vm5 = vmor %vm36_vm3, %vm37_vm4  ;;  %v35_v19 = vsel %vm27_vm2, %v34_v11, %v109_v3 }
   0x6   :  { %v40_v20 = vsel %vm38_vm5, %v39_v12, %v18_v4  ;;  %v42_v21 = vsel %vm38_vm5, %v41_v13, %v110_v5  ;;  %v44_v22 = vsel %vm38_vm5, %v43_v14, %v111_v9  ;;  %v46_v23 = vsel %vm38_vm5, %v45_v15, %v112_v10 }
   0x7   :  { %v47_v24 = vadd.f32 1e-06, %v29_v16  ;;  %v49_v25 = vadd.f32 1e-06, %v31_v17  ;;  %v51_v26 = vadd.f32 1e-06, %v40_v20  ;;  %v62_v31 = vmax.f32 %v29_v16, %v40_v20 }
   0x8   :  { %v53_v27 = vadd.f32 1e-06, %v42_v21  ;;  %v66_v33 = vmax.f32 %v31_v17, %v42_v21  ;;  %v76_v34 = vmin.f32 %v29_v16, %v40_v20  ;;  %v80_v35 = vmin.f32 %v31_v17, %v42_v21 }
   0x9   :  { %v48_v28 = vmax.f32 %v33_v18, %v47_v24  ;;  %v50_v29 = vmax.f32 %v35_v19, %v49_v25  ;;  %v52_v30 = vmax.f32 %v44_v22, %v51_v26  ;;  %v93_v61 = vshrl.u32 %v92_v60, 7 }
   0xa   :  { %v54_v32 = vmax.f32 %v46_v23, %v53_v27  ;;  %v95_v0 = vand.u32 127, %v92_v60 }
   0xb   :  { %v55_v36 = vsub.f32 %v48_v28, %v29_v16  ;;  %v56_v37 = vsub.f32 %v50_v29, %v31_v17  ;;  %v58_v38 = vsub.f32 %v52_v30, %v40_v20  ;;  %v61_v39 = vmin.f32 %v48_v28, %v52_v30 }
   0xc   :  { %v59_v40 = vsub.f32 %v54_v32, %v42_v21  ;;  %v65_v41 = vmin.f32 %v50_v29, %v54_v32  ;;  %v75_v42 = vmax.f32 %v48_v28, %v52_v30  ;;  %v79_v43 = vmax.f32 %v50_v29, %v54_v32 }
   0xd   :  { %v57_v44 = vmul.f32 %v56_v37, %v55_v36  ;;  %v63_v45 = vsub.f32 %v61_v39, %v62_v31  ;;  %v96_v1 = vmul.u32 128, %v93_v61 }
   0xe   :  { %v60_v46 = vmul.f32 %v59_v40, %v58_v38  ;;  %v67_v47 = vsub.f32 %v65_v41, %v66_v33  ;;  %v77_v48 = vsub.f32 %v75_v42, %v76_v34  ;;  %v81_v49 = vsub.f32 %v79_v43, %v80_v35 }
   0xf   :  { %v64_v50 = vmax.f32 %v63_v45, 0.0  ;;  %v99_v5 = vadd.s32 %v96_v1, %v95_v0 }
  0x10   :  { %v68_v51 = vmax.f32 %v67_v47, 0.0  ;;  %v70_v52 = vadd.f32 %v60_v46, %v57_v44  ;;  %v78_v53 = vmax.f32 %v77_v48, 0.0  ;;  %v82_v54 = vmax.f32 %v81_v49, 0.0 }
  0x11   :  { %vm100_vm6 = vcmp.lt.s32.totalorder %v99_v5, 8 }
  0x12   :  { %v69_v55 = vmul.f32 %v68_v51, %v64_v50  ;;  %v83_v56 = vmul.f32 %v82_v54, %v78_v53 }
  0x14   :  { %v71_v57 = vsub.f32 %v70_v52, %v69_v55  ;;  %v85_v58 = vadd.f32 1e-07, %v83_v56 }
  0x16   :  { %v72_v59 = vadd.f32 1e-07, %v71_v57  ;;  %113 = vrcp.f32 %v85_v58  ;;  %v84_v62 = vsub.f32 %v83_v56, %v71_v57 }
  0x18   :  { %115 = vrcp.f32 %v72_v59 }
  0x23   :  { %v114_v63 = vpop.eup %113 }
  0x24   :  { %v87_v2 = vmul.f32 %v114_v63, %v84_v62 }
  0x25   :  { %v116_v3 = vpop.eup %115 }
  0x26   :  { %v74_v4 = vmul.f32 %v116_v3, %v69_v55 }
  0x28   :  { %v88_v6 = vsub.f32 %v74_v4, %v87_v2 }
  0x2a   :  { %v89_v7 = vsub.f32 1.0, %v88_v6 }
  0x2c   :  { %v90_v8 = vmax.f32 %v89_v7, 0.0 }
  0x2e   :  { %v101_v9 = vsel %vm100_vm6, %v90_v8, 0.0 }
  0x2f   :  { %102 = vst [vmem:[%s161_s2] sm:$0xff] %v101_v9 }

</bundles_post_ra>
